<compile_context>
chip_gen: v6e
topology: v6e:2x2x1
jax: 0.10.0
libtpu: 0.0.40
codegen_flags: <defaults>
</compile_context>

<pallas_src>
import functools

import jax
import jax.numpy as jnp
import numpy as np
from jax.experimental import pallas as pl
from jax.experimental.pallas import tpu as pltpu


def _round_up(x, m):
    return (x + m - 1) // m * m


def _dconv2d_phase_kernel(x_ref, w_ref, ba_ref, o_ref, *, s, p, K, T, w_ld, tile):
    """One (batch, row-tile) grid step; computes all s*s output phases.

    x_ref : (C_in, L_in)             bf16  flat padded input rows (+halo) for this tile
    w_ref : (s*s, T*T, C_out, C_in)  bf16  BN-scale-folded per-phase/tap weights
    ba_ref: (2, C_out, 1)            f32   [0] = folded bias, [1] = PReLU alpha
    o_ref : (s*s, C_out, TILE)             lane-dense per-phase flat output rows
    """
    bias = ba_ref[0]
    alpha = ba_ref[1]
    c_out = w_ref.shape[2]
    # TODO(synk): for very small C_out/C_in a VPU broadcast-FMA formulation would beat
    #             these tiny-contraction MXU matmuls; the matmul form is kept (general).
    for rh in range(s):
        r0h, offh = (rh + p) % s, (rh + p) // s
        for rw in range(s):
            r0w, offw = (rw + p) % s, (rw + p) // s
            r = rh * s + rw
            acc = None
            for th in range(T):
                if r0h + th * s >= K:          # tap outside the kernel -> skip (no MACs)
                    continue
                row_off = (offh + T - 1 - th) * w_ld
                for tw in range(T):
                    if r0w + tw * s >= K:
                        continue
                    start = row_off + (offw + T - 1 - tw)
                    xs = x_ref[:, start:start + tile]       # (C_in, TILE), static offset
                    d = jnp.dot(w_ref[r, th * T + tw], xs,
                                preferred_element_type=jnp.float32)
                    acc = d if acc is None else acc + d
            if acc is None:                                  # phase with no valid taps
                acc = jnp.zeros((c_out, tile), jnp.float32)
            z = acc + bias                                   # folded conv-bias + BN shift
            o_ref[r] = jnp.where(z > 0.0, z, alpha * z).astype(o_ref.dtype)


def dconv2d_block_forward(encode, decode, params, *, kernel_size, stride, padding,
                          output_padding, eps=1e-5, out_dtype=jnp.bfloat16, tile_q=None):
    """Inference forward of DConv2d_block.  NCHW in / NCHW out.

    Dropout(0.2) on `encode` is identity at inference.
    # TODO(synk): training-mode Dropout RNG and batch-statistics BatchNorm are not
    #             implemented (inference-mode semantics only).
    """
    K, s, p, op = kernel_size, stride, padding, output_padding
    assert K >= 1 and s >= 1 and p >= 0 and op >= 0

    x = jnp.concatenate([encode, decode], axis=1)            # (N, C_in, H, W)
    N, C_in, H_in, W_in = x.shape
    Wt = params["weight"]                                    # (C_in, C_out, K, K)
    C_out = Wt.shape[1]
    H_out = (H_in - 1) * s - 2 * p + K + op
    W_out = (W_in - 1) * s - 2 * p + K + op

    # ---- sub-pixel phase geometry --------------------------------------------------
    Hq, Wq = pl.cdiv(H_out, s), pl.cdiv(W_out, s)            # per-phase output extents
    T = pl.cdiv(K, s)                                        # taps per phase, per dim
    off_max = (s - 1 + p) // s

    # Shared flat row stride of the padded canvas / output tiles.  Multiple of 16 so
    # (tq % 8 == 0) output tiles are 128-multiples; promote to a 128-multiple (lane-
    # aligned row offsets) only when that costs < ~25% extra width.
    w_need = max(Wq + off_max + T - 1, W_in + T - 1)
    w_ld = _round_up(w_need, 16)
    if _round_up(w_need, 128) <= w_ld + w_ld // 4:
        w_ld = _round_up(w_need, 128)

    # ---- generation-aware VMEM budget & row tiling ----------------------------------
    try:
        cap = int(getattr(pltpu.get_tpu_info(), "vmem_capacity_bytes", 64 << 20))
    except Exception:
        cap = 64 << 20                                       # conservative (v7x-sized)
    budget = min(int(cap * 0.35), 40 << 20)
    out_isz = np.dtype(out_dtype).itemsize

    def vmem_est(tq, l_in):
        tile = tq * w_ld
        return (2 * C_in * l_in * 2                          # input block (double-buffered)
                + 2 * s * s * T * T * C_out * C_in * 2       # weights
                + 2 * s * s * C_out * tile * out_isz         # output block (double-buffered)
                + C_out * tile * 4                           # f32 accumulator
                + 2 * C_in * tile * 2                        # tap-slice staging
                + (2 << 20))                                 # slack

    def _lin(tq):
        return (tq + off_max + T) * w_ld

    if tile_q is None:
        tq = _round_up(Hq, 8)
        while vmem_est(tq, _lin(tq)) > budget and tq > 8:
            tq = max(8, _round_up(tq // 2, 8))
        if N * pl.cdiv(Hq, tq) < 2 and Hq > 8:               # keep both v7x cores busy
            tq = _round_up(pl.cdiv(Hq, 2), 8)
    else:
        tq = min(_round_up(tile_q, 8), _round_up(Hq, 8))
    n_tiles = pl.cdiv(Hq, tq)
    tq = _round_up(pl.cdiv(Hq, n_tiles), 8)                  # rebalance -> few garbage rows
    n_tiles = pl.cdiv(Hq, tq)

    tile = tq * w_ld                                         # flat output elems / phase / step
    l_in = _lin(tq)                                          # flat input elems incl. halo
    h_src = max(n_tiles * tq + off_max + T, H_in + T - 1)    # padded canvas rows

    # ---- padded input canvas (bf16, NOT zero-upsampled) -----------------------------
    xb = x.astype(jnp.bfloat16)
    canvas = jnp.zeros((N, C_in, h_src, w_ld), jnp.bfloat16)
    canvas = canvas.at[:, :, T - 1:T - 1 + H_in, T - 1:T - 1 + W_in].set(xb)
    x_flat = canvas.reshape(N, C_in, h_src * w_ld)
    if n_tiles == 1:
        l_in = h_src * w_ld                                  # whole canvas, zero-copy
        x_rows = x_flat.reshape(N, 1, C_in, l_in)
    else:
        # TODO(synk): replace this halo-duplicating stack with an in-kernel pl.ANY +
        #             pltpu.make_async_copy window fetch (only hit for very large inputs).
        x_rows = jnp.stack(
            [x_flat[:, :, i * tq * w_ld: i * tq * w_ld + l_in] for i in range(n_tiles)],
            axis=1)

    # ---- fold BN scale into the weights; build per-phase/tap (C_out, C_in) slabs ----
    scale = (params["bn_gamma"] / jnp.sqrt(params["bn_var"] + eps)).astype(jnp.float32)
    Wf = Wt.astype(jnp.float32) * scale[None, :, None, None]
    w_all = jnp.zeros((s * s, T * T, C_out, C_in), jnp.float32)
    for rh in range(s):
        r0h = (rh + p) % s
        for rw in range(s):
            r0w = (rw + p) % s
            for th in range(T):
                kh = r0h + th * s
                if kh >= K:
                    continue
                for tw in range(T):
                    kw = r0w + tw * s
                    if kw >= K:
                        continue
                    w_all = w_all.at[rh * s + rw, th * T + tw].set(Wf[:, :, kh, kw].T)
    w_all = w_all.astype(jnp.bfloat16)

    bias_f = ((params["bias"].astype(jnp.float32) - params["bn_mean"]) * scale
              + params["bn_beta"]).astype(jnp.float32)
    alpha = jnp.broadcast_to(jnp.asarray(params["prelu_alpha"], jnp.float32), (C_out,))
    ba = jnp.stack([bias_f, alpha], axis=0).reshape(2, C_out, 1)

    # ---- pallas call -----------------------------------------------------------------
    kernel = functools.partial(_dconv2d_phase_kernel, s=s, p=p, K=K, T=T,
                               w_ld=w_ld, tile=tile)
    vmem_limit = int(min(int(cap * 0.6), max(vmem_est(tq, l_in) + (8 << 20), 24 << 20)))
    out = pl.pallas_call(
        kernel,
        out_shape=jax.ShapeDtypeStruct((N, s * s, C_out, n_tiles * tile), out_dtype),
        grid_spec=pltpu.PrefetchScalarGridSpec(
            num_scalar_prefetch=0,
            grid=(N, n_tiles),
            in_specs=[
                pl.BlockSpec((None, None, C_in, l_in), lambda n, i: (n, i, 0, 0)),
                pl.BlockSpec((s * s, T * T, C_out, C_in), lambda n, i: (0, 0, 0, 0)),
                pl.BlockSpec((2, C_out, 1), lambda n, i: (0, 0, 0)),
            ],
            out_specs=pl.BlockSpec((None, s * s, C_out, tile), lambda n, i: (n, 0, 0, i)),
        ),
        compiler_params=pltpu.CompilerParams(
            dimension_semantics=("parallel", "parallel"),
            vmem_limit_bytes=vmem_limit,
        ),
    )(x_rows, w_all, ba)

    # ---- un-flatten, drop alignment garbage, interleave the s*s phases (one XLA copy) -
    out = out.reshape(N, s, s, C_out, n_tiles * tq, w_ld)[:, :, :, :, :Hq, :Wq]
    out = out.transpose(0, 3, 4, 1, 5, 2).reshape(N, C_out, Hq * s, Wq * s)
    return out[:, :, :H_out, :W_out]


def reference_forward(encode, decode, params, *, kernel_size, stride, padding,
                      output_padding, eps=1e-5):
    """Independent pure-JAX (XLA) reference.  BN is folded exactly (in f32) into the conv
    weights/bias so both paths see identically bf16-quantized operands; the conv itself is
    lax.conv_general_dilated with lhs_dilation (no phase math shared with the Pallas path)."""
    K, s, p, op = kernel_size, stride, padding, output_padding
    x = jnp.concatenate([encode, decode], axis=1).astype(jnp.bfloat16)
    scale = params["bn_gamma"] / jnp.sqrt(params["bn_var"] + eps)
    w_fold = params["weight"].astype(jnp.float32) * scale[None, :, None, None]
    w_reg = jnp.flip(w_fold, axis=(2, 3)).transpose(1, 0, 2, 3).astype(jnp.bfloat16)
    y = jax.lax.conv_general_dilated(
        x, w_reg, window_strides=(1, 1),
        padding=((K - 1 - p, K - 1 - p + op), (K - 1 - p, K - 1 - p + op)),
        lhs_dilation=(s, s),
        dimension_numbers=("NCHW", "OIHW", "NCHW"),
        preferred_element_type=jnp.float32)
    bias_f = (params["bias"] - params["bn_mean"]) * scale + params["bn_beta"]
    y = y + bias_f[None, :, None, None]
    return jnp.where(y > 0, y, params["prelu_alpha"] * y)


if __name__ == "__main__":
    root = jax.random.PRNGKey(0)

    def make_params(key, C_in, C_out, K):
        ks = jax.random.split(key, 6)
        return {
            "weight":      jax.random.normal(ks[0], (C_in, C_out, K, K), jnp.float32) * 0.1,
            "bias":        jax.random.normal(ks[1], (C_out,), jnp.float32) * 0.1,
            "bn_gamma":    1.0 + 0.1 * jax.random.normal(ks[2], (C_out,), jnp.float32),
            "bn_beta":     0.1 * jax.random.normal(ks[3], (C_out,), jnp.float32),
            "bn_mean":     0.1 * jax.random.normal(ks[4], (C_out,), jnp.float32),
            "bn_var":      1.0 + 0.5 * jax.random.uniform(ks[5], (C_out,), jnp.float32),
            "prelu_alpha": jnp.float32(0.25),    # nn.PReLU() default: one shared slope
        }

    #            name     N eC dC  H  W Cout  K  s  p op  out_dtype     tile_q
    configs = [("k3s2p1", 2, 2, 2, 8, 8, 4,   3, 2, 1, 1, jnp.float32,  None),
               ("k4s3p1", 2, 3, 3, 9, 9, 5,   4, 3, 1, 0, jnp.bfloat16, 8),     # multi-tile
               ("k3s1p1", 1, 2, 2, 8, 8, 6,   3, 1, 1, 0, jnp.bfloat16, None)]  # stride 1

    for (name, N, eC, dC, H, Wd, C_out, K, s, p, op, odt, tq) in configs:
        root, k1, k2, k3 = jax.random.split(root, 4)
        C_in = eC + dC
        encode = jax.random.normal(k1, (N, eC, H, Wd), jnp.float32)
        decode = jax.random.normal(k2, (N, dC, H, Wd), jnp.float32)
        params = make_params(k3, C_in, C_out, K)

        out = dconv2d_block_forward(encode, decode, params, kernel_size=K, stride=s,
                                    padding=p, output_padding=op, out_dtype=odt,
                                    tile_q=tq)
        out = jax.block_until_ready(out)

        H_out = (H - 1) * s - 2 * p + K + op
        W_out = (Wd - 1) * s - 2 * p + K + op
        assert out.shape == (N, C_out, H_out, W_out), (name, out.shape)

        ref = reference_forward(encode, decode, params, kernel_size=K, stride=s,
                                padding=p, output_padding=op)
        err = float(jnp.max(jnp.abs(out.astype(jnp.float32) - ref)))
        # f32 output: identical bf16 operands + f32 accumulation -> summation-order noise
        # only.  bf16 output additionally rounds the stored result (~0.4% relative).
        tol = 2e-3 + (0.0 if odt == jnp.float32 else 8e-3) * max(1.0, float(jnp.max(jnp.abs(ref))))
        assert err < tol, (name, err, tol)

    print("KERNEL_OK")
</pallas_src>

<mosaic_0001>
module attributes {stable_mosaic.version = 11 : i64} {
  func.func @_dconv2d_phase_kernel(%arg0: i32, %arg1: i32, %arg2: memref<1x1x4x176xbf16, #tpu.memory_space<vmem>>, %arg3: memref<4x4x4x4xbf16, #tpu.memory_space<vmem>>, %arg4: memref<2x4x1xf32, #tpu.memory_space<vmem>>, %arg5: memref<1x4x4x128xf32, #tpu.memory_space<vmem>>) attributes {dimension_semantics = [#tpu.dimension_semantics<parallel>, #tpu.dimension_semantics<parallel>], iteration_bounds = array<i64: 2, 1>, scalar_prefetch = 0 : i64, scratch_operands = 0 : i64, tpu.core_type = #tpu.core_type<tc>, window_params = [{transform_indices = @transform_0, window_bounds = array<i64: 1, 1, 4, 176>}, {pipeline_mode = #tpu.pipeline_mode<synchronous>, transform_indices = @transform_1, window_bounds = array<i64: 4, 4, 4, 4>}, {pipeline_mode = #tpu.pipeline_mode<synchronous>, transform_indices = @transform_2, window_bounds = array<i64: 2, 4, 1>}, {transform_indices = @transform_3, window_bounds = array<i64: 1, 4, 4, 128>}]} {
    %c0 = arith.constant 0 : index
    %c0_0 = arith.constant 0 : index
    %c0_1 = arith.constant 0 : index
    %0 = vector.load %arg4[%c0, %c0_0, %c0_1] : memref<2x4x1xf32, #tpu.memory_space<vmem>>, vector<1x4x1xf32>
    %1 = vector.shape_cast %0 : vector<1x4x1xf32> to vector<4x1xf32>
    %c1 = arith.constant 1 : index
    %c0_2 = arith.constant 0 : index
    %c0_3 = arith.constant 0 : index
    %2 = vector.load %arg4[%c1, %c0_2, %c0_3] : memref<2x4x1xf32, #tpu.memory_space<vmem>>, vector<1x4x1xf32>
    %3 = vector.shape_cast %2 : vector<1x4x1xf32> to vector<4x1xf32>
    %c0_4 = arith.constant 0 : index
    %c0_5 = arith.constant 0 : index
    %c0_6 = arith.constant 0 : index
    %c17 = arith.constant 17 : index
    %4 = vector.load %arg2[%c0_4, %c0_5, %c0_6, %c17] : memref<1x1x4x176xbf16, #tpu.memory_space<vmem>>, vector<1x1x4x128xbf16>
    %5 = vector.shape_cast %4 : vector<1x1x4x128xbf16> to vector<4x128xbf16>
    %c0_7 = arith.constant 0 : index
    %c0_8 = arith.constant 0 : index
    %c0_9 = arith.constant 0 : index
    %c0_10 = arith.constant 0 : index
    %6 = vector.load %arg3[%c0_7, %c0_8, %c0_9, %c0_10] : memref<4x4x4x4xbf16, #tpu.memory_space<vmem>>, vector<1x1x4x4xbf16>
    %7 = vector.shape_cast %6 : vector<1x1x4x4xbf16> to vector<4x4xbf16>
    %cst = arith.constant dense<0.000000e+00> : vector<4x128xf32>
    %8 = tpu.matmul %7, %5, %cst {dimension_numbers = #tpu.dot_dimension_numbers<[1], [0], [0], [1], [0, 0, 1, 1], [], []>} : vector<4x4xbf16>, vector<4x128xbf16>, vector<4x128xf32> -> vector<4x128xf32>
    %9 = vector.broadcast %1 : vector<4x1xf32> to vector<4x128xf32>
    %10 = arith.addf %8, %9 : vector<4x128xf32>
    %cst_11 = arith.constant 0.000000e+00 : f32
    %11 = vector.broadcast %cst_11 : f32 to vector<4x128xf32>
    %12 = arith.cmpf ogt, %10, %11 : vector<4x128xf32>
    %13 = vector.broadcast %3 : vector<4x1xf32> to vector<4x128xf32>
    %14 = arith.mulf %13, %10 : vector<4x128xf32>
    %15 = arith.select %12, %10, %14 : vector<4x128xi1>, vector<4x128xf32>
    %c0_12 = arith.constant 0 : index
    %c0_13 = arith.constant 0 : index
    %c0_14 = arith.constant 0 : index
    %c0_15 = arith.constant 0 : index
    %16 = vector.load %arg5[%c0_12, %c0_13, %c0_14, %c0_15] : memref<1x4x4x128xf32, #tpu.memory_space<vmem>>, vector<1x1x4x128xf32>
    %17 = vector.shape_cast %16 : vector<1x1x4x128xf32> to vector<4x128xf32>
    %18 = vector.shape_cast %15 : vector<4x128xf32> to vector<1x1x4x128xf32>
    tpu.vector_store %arg5[%c0_12, %c0_13, %c0_14, %c0_15], %18 {strides = array<i32>} : memref<1x4x4x128xf32, #tpu.memory_space<vmem>>, vector<1x1x4x128xf32>,
    %c0_16 = arith.constant 0 : index
    %c0_17 = arith.constant 0 : index
    %c0_18 = arith.constant 0 : index
    %c18 = arith.constant 18 : index
    %19 = vector.load %arg2[%c0_16, %c0_17, %c0_18, %c18] : memref<1x1x4x176xbf16, #tpu.memory_space<vmem>>, vector<1x1x4x128xbf16>
    %20 = vector.shape_cast %19 : vector<1x1x4x128xbf16> to vector<4x128xbf16>
    %c1_19 = arith.constant 1 : index
    %c0_20 = arith.constant 0 : index
    %c0_21 = arith.constant 0 : index
    %c0_22 = arith.constant 0 : index
    %21 = vector.load %arg3[%c1_19, %c0_20, %c0_21, %c0_22] : memref<4x4x4x4xbf16, #tpu.memory_space<vmem>>, vector<1x1x4x4xbf16>
    %22 = vector.shape_cast %21 : vector<1x1x4x4xbf16> to vector<4x4xbf16>
    %cst_23 = arith.constant dense<0.000000e+00> : vector<4x128xf32>
    %23 = tpu.matmul %22, %20, %cst_23 {dimension_numbers = #tpu.dot_dimension_numbers<[1], [0], [0], [1], [0, 0, 1, 1], [], []>} : vector<4x4xbf16>, vector<4x128xbf16>, vector<4x128xf32> -> vector<4x128xf32>
    %c0_24 = arith.constant 0 : index
    %c0_25 = arith.constant 0 : index
    %c0_26 = arith.constant 0 : index
    %c17_27 = arith.constant 17 : index
    %24 = vector.load %arg2[%c0_24, %c0_25, %c0_26, %c17_27] : memref<1x1x4x176xbf16, #tpu.memory_space<vmem>>, vector<1x1x4x128xbf16>
    %25 = vector.shape_cast %24 : vector<1x1x4x128xbf16> to vector<4x128xbf16>
    %c1_28 = arith.constant 1 : index
    %c1_29 = arith.constant 1 : index
    %c0_30 = arith.constant 0 : index
    %c0_31 = arith.constant 0 : index
    %26 = vector.load %arg3[%c1_28, %c1_29, %c0_30, %c0_31] : memref<4x4x4x4xbf16, #tpu.memory_space<vmem>>, vector<1x1x4x4xbf16>
    %27 = vector.shape_cast %26 : vector<1x1x4x4xbf16> to vector<4x4xbf16>
    %cst_32 = arith.constant dense<0.000000e+00> : vector<4x128xf32>
    %28 = tpu.matmul %27, %25, %cst_32 {dimension_numbers = #tpu.dot_dimension_numbers<[1], [0], [0], [1], [0, 0, 1, 1], [], []>} : vector<4x4xbf16>, vector<4x128xbf16>, vector<4x128xf32> -> vector<4x128xf32>
    %29 = arith.addf %23, %28 : vector<4x128xf32>
    %30 = vector.broadcast %1 : vector<4x1xf32> to vector<4x128xf32>
    %31 = arith.addf %29, %30 : vector<4x128xf32>
    %cst_33 = arith.constant 0.000000e+00 : f32
    %32 = vector.broadcast %cst_33 : f32 to vector<4x128xf32>
    %33 = arith.cmpf ogt, %31, %32 : vector<4x128xf32>
    %34 = vector.broadcast %3 : vector<4x1xf32> to vector<4x128xf32>
    %35 = arith.mulf %34, %31 : vector<4x128xf32>
    %36 = arith.select %33, %31, %35 : vector<4x128xi1>, vector<4x128xf32>
    %c0_34 = arith.constant 0 : index
    %c1_35 = arith.constant 1 : index
    %c0_36 = arith.constant 0 : index
    %c0_37 = arith.constant 0 : index
    %37 = vector.load %arg5[%c0_34, %c1_35, %c0_36, %c0_37] : memref<1x4x4x128xf32, #tpu.memory_space<vmem>>, vector<1x1x4x128xf32>
    %38 = vector.shape_cast %37 : vector<1x1x4x128xf32> to vector<4x128xf32>
    %39 = vector.shape_cast %36 : vector<4x128xf32> to vector<1x1x4x128xf32>
    tpu.vector_store %arg5[%c0_34, %c1_35, %c0_36, %c0_37], %39 {strides = array<i32>} : memref<1x4x4x128xf32, #tpu.memory_space<vmem>>, vector<1x1x4x128xf32>,
    %c0_38 = arith.constant 0 : index
    %c0_39 = arith.constant 0 : index
    %c0_40 = arith.constant 0 : index
    %c33 = arith.constant 33 : index
    %40 = vector.load %arg2[%c0_38, %c0_39, %c0_40, %c33] : memref<1x1x4x176xbf16, #tpu.memory_space<vmem>>, vector<1x1x4x128xbf16>
    %41 = vector.shape_cast %40 : vector<1x1x4x128xbf16> to vector<4x128xbf16>
    %c2 = arith.constant 2 : index
    %c0_41 = arith.constant 0 : index
    %c0_42 = arith.constant 0 : index
    %c0_43 = arith.constant 0 : index
    %42 = vector.load %arg3[%c2, %c0_41, %c0_42, %c0_43] : memref<4x4x4x4xbf16, #tpu.memory_space<vmem>>, vector<1x1x4x4xbf16>
    %43 = vector.shape_cast %42 : vector<1x1x4x4xbf16> to vector<4x4xbf16>
    %cst_44 = arith.constant dense<0.000000e+00> : vector<4x128xf32>
    %44 = tpu.matmul %43, %41, %cst_44 {dimension_numbers = #tpu.dot_dimension_numbers<[1], [0], [0], [1], [0, 0, 1, 1], [], []>} : vector<4x4xbf16>, vector<4x128xbf16>, vector<4x128xf32> -> vector<4x128xf32>
    %c0_45 = arith.constant 0 : index
    %c0_46 = arith.constant 0 : index
    %c0_47 = arith.constant 0 : index
    %c17_48 = arith.constant 17 : index
    %45 = vector.load %arg2[%c0_45, %c0_46, %c0_47, %c17_48] : memref<1x1x4x176xbf16, #tpu.memory_space<vmem>>, vector<1x1x4x128xbf16>
    %46 = vector.shape_cast %45 : vector<1x1x4x128xbf16> to vector<4x128xbf16>
    %c2_49 = arith.constant 2 : index
    %c2_50 = arith.constant 2 : index
    %c0_51 = arith.constant 0 : index
    %c0_52 = arith.constant 0 : index
    %47 = vector.load %arg3[%c2_49, %c2_50, %c0_51, %c0_52] : memref<4x4x4x4xbf16, #tpu.memory_space<vmem>>, vector<1x1x4x4xbf16>
    %48 = vector.shape_cast %47 : vector<1x1x4x4xbf16> to vector<4x4xbf16>
    %cst_53 = arith.constant dense<0.000000e+00> : vector<4x128xf32>
    %49 = tpu.matmul %48, %46, %cst_53 {dimension_numbers = #tpu.dot_dimension_numbers<[1], [0], [0], [1], [0, 0, 1, 1], [], []>} : vector<4x4xbf16>, vector<4x128xbf16>, vector<4x128xf32> -> vector<4x128xf32>
    %50 = arith.addf %44, %49 : vector<4x128xf32>
    %51 = vector.broadcast %1 : vector<4x1xf32> to vector<4x128xf32>
    %52 = arith.addf %50, %51 : vector<4x128xf32>
    %cst_54 = arith.constant 0.000000e+00 : f32
    %53 = vector.broadcast %cst_54 : f32 to vector<4x128xf32>
    %54 = arith.cmpf ogt, %52, %53 : vector<4x128xf32>
    %55 = vector.broadcast %3 : vector<4x1xf32> to vector<4x128xf32>
    %56 = arith.mulf %55, %52 : vector<4x128xf32>
    %57 = arith.select %54, %52, %56 : vector<4x128xi1>, vector<4x128xf32>
    %c0_55 = arith.constant 0 : index
    %c2_56 = arith.constant 2 : index
    %c0_57 = arith.constant 0 : index
    %c0_58 = arith.constant 0 : index
    %58 = vector.load %arg5[%c0_55, %c2_56, %c0_57, %c0_58] : memref<1x4x4x128xf32, #tpu.memory_space<vmem>>, vector<1x1x4x128xf32>
    %59 = vector.shape_cast %58 : vector<1x1x4x128xf32> to vector<4x128xf32>
    %60 = vector.shape_cast %57 : vector<4x128xf32> to vector<1x1x4x128xf32>
    tpu.vector_store %arg5[%c0_55, %c2_56, %c0_57, %c0_58], %60 {strides = array<i32>} : memref<1x4x4x128xf32, #tpu.memory_space<vmem>>, vector<1x1x4x128xf32>,
    %c0_59 = arith.constant 0 : index
    %c0_60 = arith.constant 0 : index
    %c0_61 = arith.constant 0 : index
    %c34 = arith.constant 34 : index
    %61 = vector.load %arg2[%c0_59, %c0_60, %c0_61, %c34] : memref<1x1x4x176xbf16, #tpu.memory_space<vmem>>, vector<1x1x4x128xbf16>
    %62 = vector.shape_cast %61 : vector<1x1x4x128xbf16> to vector<4x128xbf16>
    %c3 = arith.constant 3 : index
    %c0_62 = arith.constant 0 : index
    %c0_63 = arith.constant 0 : index
    %c0_64 = arith.constant 0 : index
    %63 = vector.load %arg3[%c3, %c0_62, %c0_63, %c0_64] : memref<4x4x4x4xbf16, #tpu.memory_space<vmem>>, vector<1x1x4x4xbf16>
    %64 = vector.shape_cast %63 : vector<1x1x4x4xbf16> to vector<4x4xbf16>
    %cst_65 = arith.constant dense<0.000000e+00> : vector<4x128xf32>
    %65 = tpu.matmul %64, %62, %cst_65 {dimension_numbers = #tpu.dot_dimension_numbers<[1], [0], [0], [1], [0, 0, 1, 1], [], []>} : vector<4x4xbf16>, vector<4x128xbf16>, vector<4x128xf32> -> vector<4x128xf32>
    %c0_66 = arith.constant 0 : index
    %c0_67 = arith.constant 0 : index
    %c0_68 = arith.constant 0 : index
    %c33_69 = arith.constant 33 : index
    %66 = vector.load %arg2[%c0_66, %c0_67, %c0_68, %c33_69] : memref<1x1x4x176xbf16, #tpu.memory_space<vmem>>, vector<1x1x4x128xbf16>
    %67 = vector.shape_cast %66 : vector<1x1x4x128xbf16> to vector<4x128xbf16>
    %c3_70 = arith.constant 3 : index
    %c1_71 = arith.constant 1 : index
    %c0_72 = arith.constant 0 : index
    %c0_73 = arith.constant 0 : index
    %68 = vector.load %arg3[%c3_70, %c1_71, %c0_72, %c0_73] : memref<4x4x4x4xbf16, #tpu.memory_space<vmem>>, vector<1x1x4x4xbf16>
    %69 = vector.shape_cast %68 : vector<1x1x4x4xbf16> to vector<4x4xbf16>
    %cst_74 = arith.constant dense<0.000000e+00> : vector<4x128xf32>
    %70 = tpu.matmul %69, %67, %cst_74 {dimension_numbers = #tpu.dot_dimension_numbers<[1], [0], [0], [1], [0, 0, 1, 1], [], []>} : vector<4x4xbf16>, vector<4x128xbf16>, vector<4x128xf32> -> vector<4x128xf32>
    %71 = arith.addf %65, %70 : vector<4x128xf32>
    %c0_75 = arith.constant 0 : index
    %c0_76 = arith.constant 0 : index
    %c0_77 = arith.constant 0 : index
    %c18_78 = arith.constant 18 : index
    %72 = vector.load %arg2[%c0_75, %c0_76, %c0_77, %c18_78] : memref<1x1x4x176xbf16, #tpu.memory_space<vmem>>, vector<1x1x4x128xbf16>
    %73 = vector.shape_cast %72 : vector<1x1x4x128xbf16> to vector<4x128xbf16>
    %c3_79 = arith.constant 3 : index
    %c2_80 = arith.constant 2 : index
    %c0_81 = arith.constant 0 : index
    %c0_82 = arith.constant 0 : index
    %74 = vector.load %arg3[%c3_79, %c2_80, %c0_81, %c0_82] : memref<4x4x4x4xbf16, #tpu.memory_space<vmem>>, vector<1x1x4x4xbf16>
    %75 = vector.shape_cast %74 : vector<1x1x4x4xbf16> to vector<4x4xbf16>
    %cst_83 = arith.constant dense<0.000000e+00> : vector<4x128xf32>
    %76 = tpu.matmul %75, %73, %cst_83 {dimension_numbers = #tpu.dot_dimension_numbers<[1], [0], [0], [1], [0, 0, 1, 1], [], []>} : vector<4x4xbf16>, vector<4x128xbf16>, vector<4x128xf32> -> vector<4x128xf32>
    %77 = arith.addf %71, %76 : vector<4x128xf32>
    %c0_84 = arith.constant 0 : index
    %c0_85 = arith.constant 0 : index
    %c0_86 = arith.constant 0 : index
    %c17_87 = arith.constant 17 : index
    %78 = vector.load %arg2[%c0_84, %c0_85, %c0_86, %c17_87] : memref<1x1x4x176xbf16, #tpu.memory_space<vmem>>, vector<1x1x4x128xbf16>
    %79 = vector.shape_cast %78 : vector<1x1x4x128xbf16> to vector<4x128xbf16>
    %c3_88 = arith.constant 3 : index
    %c3_89 = arith.constant 3 : index
    %c0_90 = arith.constant 0 : index
    %c0_91 = arith.constant 0 : index
    %80 = vector.load %arg3[%c3_88, %c3_89, %c0_90, %c0_91] : memref<4x4x4x4xbf16, #tpu.memory_space<vmem>>, vector<1x1x4x4xbf16>
    %81 = vector.shape_cast %80 : vector<1x1x4x4xbf16> to vector<4x4xbf16>
    %cst_92 = arith.constant dense<0.000000e+00> : vector<4x128xf32>
    %82 = tpu.matmul %81, %79, %cst_92 {dimension_numbers = #tpu.dot_dimension_numbers<[1], [0], [0], [1], [0, 0, 1, 1], [], []>} : vector<4x4xbf16>, vector<4x128xbf16>, vector<4x128xf32> -> vector<4x128xf32>
    %83 = arith.addf %77, %82 : vector<4x128xf32>
    %84 = vector.broadcast %1 : vector<4x1xf32> to vector<4x128xf32>
    %85 = arith.addf %83, %84 : vector<4x128xf32>
    %cst_93 = arith.constant 0.000000e+00 : f32
    %86 = vector.broadcast %cst_93 : f32 to vector<4x128xf32>
    %87 = arith.cmpf ogt, %85, %86 : vector<4x128xf32>
    %88 = vector.broadcast %3 : vector<4x1xf32> to vector<4x128xf32>
    %89 = arith.mulf %88, %85 : vector<4x128xf32>
    %90 = arith.select %87, %85, %89 : vector<4x128xi1>, vector<4x128xf32>
    %c0_94 = arith.constant 0 : index
    %c3_95 = arith.constant 3 : index
    %c0_96 = arith.constant 0 : index
    %c0_97 = arith.constant 0 : index
    %91 = vector.load %arg5[%c0_94, %c3_95, %c0_96, %c0_97] : memref<1x4x4x128xf32, #tpu.memory_space<vmem>>, vector<1x1x4x128xf32>
    %92 = vector.shape_cast %91 : vector<1x1x4x128xf32> to vector<4x128xf32>
    %93 = vector.shape_cast %90 : vector<4x128xf32> to vector<1x1x4x128xf32>
    tpu.vector_store %arg5[%c0_94, %c3_95, %c0_96, %c0_97], %93 {strides = array<i32>} : memref<1x4x4x128xf32, #tpu.memory_space<vmem>>, vector<1x1x4x128xf32>,
    return
  }
  func.func @transform_0(%arg0: i32, %arg1: i32) -> (i32, i32, i32, i32) {
    %c0_i32 = arith.constant 0 : i32
    %c0_i32_0 = arith.constant 0 : i32
    %c0_i32_1 = arith.constant 0 : i32
    return %arg0, %arg1, %c0_i32, %c0_i32_0 : i32, i32, i32, i32
  }
  func.func @transform_1(%arg0: i32, %arg1: i32) -> (i32, i32, i32, i32) {
    %c0_i32 = arith.constant 0 : i32
    %c0_i32_0 = arith.constant 0 : i32
    %c0_i32_1 = arith.constant 0 : i32
    %c0_i32_2 = arith.constant 0 : i32
    %c0_i32_3 = arith.constant 0 : i32
    return %c0_i32, %c0_i32_0, %c0_i32_1, %c0_i32_2 : i32, i32, i32, i32
  }
  func.func @transform_2(%arg0: i32, %arg1: i32) -> (i32, i32, i32) {
    %c0_i32 = arith.constant 0 : i32
    %c0_i32_0 = arith.constant 0 : i32
    %c0_i32_1 = arith.constant 0 : i32
    %c0_i32_2 = arith.constant 0 : i32
    return %c0_i32, %c0_i32_0, %c0_i32_1 : i32, i32, i32
  }
  func.func @transform_3(%arg0: i32, %arg1: i32) -> (i32, i32, i32, i32) {
    %c0_i32 = arith.constant 0 : i32
    %c0_i32_0 = arith.constant 0 : i32
    %c0_i32_1 = arith.constant 0 : i32
    return %arg0, %c0_i32, %c0_i32_0, %arg1 : i32, i32, i32, i32
  }
}

</mosaic_0001>

<bundles_post_ra>
// kernel: tpu_custom_call.1
= control target key start
LH: loop header
LB: loop body
LE: loop exit
PB: predicated region body
PF: predicated region fallthrough
CT: control target
= control target key end

     0   :  { %8 = vsyncpa [#allocation3], 0  ;;  %s1439_s0 = inlined_call_operand.vmem [shape: bf16[2,1,4,176], index: 0, kind: input, shape index: {}]   ;;  %s1440_s1 = inlined_call_operand.hbm [shape: bf16[4,4,4,4], index: 1, kind: input, shape index: {}]   ;;  %s1441_s2 = inlined_call_operand.vmem [shape: f32[2,4,1], index: 2, kind: input, shape index: {}]   ;;  %s1442_s3 = inlined_call_operand.hbm [shape: f32[2,4,4,128], index: 3, kind: output, shape index: {}]  }
   0x1   :  { %9 = vsyncpa [#allocation4], 0 }
   0x2   :  { %11 = vsyncpa [#allocation4 + $0x1], 0  ;;  %s1228_s12 = smov 0   ;;  %s1230_s13 = smov 0  }
   0x3   :  { %s1232_s14 = smov 0   ;;  %s1234_s15 = smov 0  }
   0x4   :  { %s1236_s16 = smov 0   ;;  %s1238_s17 = smov 0  }
   0x5 LB: > { %s900_s18 = sadd.s32 4294967295, %s1193_s17   ;;  %s901_s19 = sadd.s32 4294967294, %s1193_s17   ;;  %s1193_s17 = sphi %s1238_s17, %s17_s17   ;;  %s1189_s16 = sphi %s1236_s16, %s1451_s16   ;;  %s1185_s15 = sphi %s1234_s15, %s1450_s15   ;;  %s1181_s14 = sphi %s1232_s14, %s1449_s14   ;;  %s1177_s13 = sphi %s1230_s13, %s1448_s13   ;;  %s1173_s12 = sphi %s1228_s12, %s1447_s12  }
   0x6   : > { %s29_s20 = sadd.s32 1, %s1189_s16  ;;  %s108_s21 = sadd.s32 1, %s1181_s14 }
   0x7   : > { %p31_p0 = scmp.ge.s32.totalorder %s29_s20, 2  ;;  %p118_p1 = scmp.ne.s32.totalorder %s1181_s14, %s1177_s13 }
   0x8   : > { %p119_p2 = scmp.eq.s32.totalorder %s900_s18, 1  ;;  %p124_p3 = scmp.ne.s32.totalorder %s1177_s13, %s1173_s12 }
   0x9   : > { %s1453_s20 = smov (%p31_p0, %s29_s20), 0  ;;  %p125_p5 = scmp.eq.s32.totalorder %s901_s19, 1 }
   0xa   : > { %p1268_p4 = por %p119_p2, %p118_p1  ;;  %s103_s23 = ssub.s32 %s1189_s16, %s1453_s20 }
   0xb   : > { %p902_p6 = scmp.ge.s32.totalorder %s1193_s17, 1  ;;  %p106_p7 = scmp.eq.s32.totalorder %s103_s23, 0 }
   0xc   : > { %p1275_p8 = por %p125_p5, %p124_p3  ;;  %p132_p9 = scmp.lt.s32.totalorder %s1193_s17, 3 }
   0xd   : > { %s1281_s25 = scalar_select %p106_p7, %s1181_s14, %s108_s21  }
   0xe   : > { %p1283_p10 = pnand %p902_p6, %p132_p9  ;;  %p1287_p11 = scmp.eq.s32.totalorder %s900_s18, 0 }
   0xf   : > { %s1195_s28 = smov [#allocation2]  }
  0x10   : > { %p1014_p12 = pneg %p1283_p10  ;;  %s144_s29 = sshll.u32 %s1195_s28, 4  ;;  %s145_s29 = int_to_ptr.vmem [resolvable:$true] %s144_s29 }
  0x11   : > { %s1098_s30 = scalar_lea.vmem %s145_s29, 512  ;;  %p1106_p5 = scmp.lt.s32.totalorder %s145_s29, %s145_s29 }
  0x12   : > { %p1015_p13 = pnand %p1287_p11, %p1014_p12  ;;  %p1099_p1 = scmp.ne.s32.totalorder %s145_s29, %s1098_s30 }
  0x13   : > { %p1107_p6 = scmp.lt.s32.totalorder %s1098_s30, %s1098_s30 }
  0x14   : > { %p1089_p0 = pneg %p1015_p13 }
  0x15   : > { %p1108_p7 = por %p1107_p6, %p1106_p5 }
  0x16   : > { %p1101_p2 = pnand %p1099_p1, %p1089_p0 }
  0x18   : > { %p1102_p3 = pneg %p1101_p2 }
  0x1a   : > { %p1109_p9 = pnand %p1108_p7, %p1102_p3 }
  0x1c   : > { %1112 = shalt.err (!%p1109_p9)
}
  0x1d   : > { %s1196_s4 = smov 32   ;;  %s1197_s5 = smov 2  }
  0x1e   : > { %1017 = dma.hbm_to_vmem [thread:$0]  (!%p1015_p13), %s1440_s1, 512, %s145_s29, [#allocation3], %s1196_s4, %s1196_s4, %s1197_s5  }
  0x1f   : > { %175 = sbr.rel (%p1283_p10) target bundleno = 414 (0x19e), region = 32 }
  0x24   : > { %1164 = dma.done.wait (%p1287_p11), [#allocation3], 512  }
  0x25   : > { %1166 = vsyncadd (%p1287_p11), [#allocation3], 4294966784  ;;  %p203_p12 = scmp.lt.s32.totalorder %s1185_s15, 1  ;;  %v1198_v0 = vmov 0.0   ;;  %vm1199_vm0 = vmmov 0   ;;  %s1200_s19 = smov 111  }
  0x26   : > { %954 = vmatprep.subr.bf16.mxu0 %v1198_v0  ;;  %960 = vmatprep.subr.bf16.mxu1 %v1198_v0  ;;  %s1201_s21 = smov 110   ;;  %s1202_s23 = smov 95   ;;  %v1204_v3 = vmov 0   ;;  %v213_v4 = vld [vmem:[%s1441_s2] sm:$0xf]  ;;  %vm236_vm1 = vcmask 908288  }
  0x27   : > { %s204_s8 = scalar_select %p203_p12, %s1185_s15, 1  ;;  %956 = vmatprep.mubr.msk.bf16.mxu0 %vm1199_vm0, %v1198_v0  ;;  %962 = vmatprep.mubr.msk.bf16.mxu1 %vm1199_vm0, %v1198_v0  ;;  %v910_v5 = vld [vmem:[%s1441_s2 + $0x4] sm:$0xf]  ;;  %vm242_vm2 = vcmask 1041408   ;;  %vm364_vm3 = vcmask 900096   ;;  %vm238_vm4 = vcmask 31744  }
  0x28   : > { %s1203_s26 = smov 94   ;;  %1085 = vset.pattern.permute.xlu0 %v1204_v3  ;;  %1086 = vset.pattern.permute.xlu1 %v1204_v3  ;;  %v217_v14 = vld [vmem:[#allocation2] sm:$0x3]  ;;  %v299_v15 = vld [vmem:[#allocation2 + $0xa] sm:$0x3]  ;;  %vm487_vm5 = vcmask 777216  }
  0x29   : > { %s934_s9 = sshll.u32 %s204_s8, 2  ;;  %v297_v24 = vld [vmem:[#allocation2 + $0x8] sm:$0x3]  ;;  %v422_v25 = vld [vmem:[#allocation2 + $0x14] sm:$0x3]  ;;  %vm610_vm6 = vcmask 769024  }
  0x2a   : > { %s211_s18 = scalar_lea.vmem %s1439_s0, %s934_s9  ;;  %v420_v34 = vld [vmem:[#allocation2 + $0x10] sm:$0x3]  ;;  %v545_v35 = vld [vmem:[#allocation2 + $0x1a] sm:$0x3]  ;;  %v543_v44 = vld [vmem:[#allocation2 + $0x18] sm:$0x3] }
  0x2b   : > { %v913_v1 = vld.sshfl [vmem:[%s211_s18] sm:$0x33 pattern:$0x76325410]  ;;  %v660_v45 = vld [vmem:[#allocation2 + $0x1c] sm:$0x3] }
  0x2c   : > { %309 = vrot.lane.b32.xlu1 %v913_v1, %s1200_s19  ;;  %232 = vrot.lane.b32.xlu0 %v913_v1, %s1200_s19  ;;  %v231_v2 = vcombine.high %v913_v1, %v913_v1  ;;  %v724_v50 = vld [vmem:[#allocation2 + $0x1e] sm:$0x3]  ;;  %s200_s4 = sand.u32 1, %s1177_s13   ;;  %s935_s8 = sshll.u32 %s1185_s15, 8 }
  0x2d   : > { %s907_s5 = sshll.u32 %s200_s4, 4  ;;  %s1389_s11 = scalar_lea.hbm %s1442_s3, %s935_s8 }
  0x2e   : > { %s1374_s6 = scalar_lea.vmem [#allocation5], %s907_s5  ;;  %s1394_s15 = scalar_lea.sflag [#allocation4], %s200_s4 }
  0x2f   : > { %s807_s7 = sshll.u32 %s1374_s6, 4  ;;  %s1383_s7 = int_to_ptr.vmem [resolvable:$true] %s807_s7 }
  0x30   : > { %311 = vrot.lane.b32.xlu1 %v231_v2, %s1200_s19  ;;  %234 = vrot.lane.b32.xlu0 %v231_v2, %s1200_s19  ;;  %s1113_s18 = scalar_lea.vmem %s1383_s7, 256 }
  0x31   : > { %p1114_p10 = scmp.ne.s32.totalorder %s1383_s7, %s1113_s18 }
  0x33   : > { %p1115_p11 = pnand %p1114_p10, %p1268_p4 }
  0x34   : > { %362 = vrot.lane.b32.xlu1 %v231_v2, %s1201_s21  ;;  %360 = vrot.lane.b32.xlu0 %v913_v1, %s1201_s21 }
  0x35   : > { %p1116_p13 = pneg %p1115_p11 }
  0x38   : > { %434 = vrot.lane.b32.xlu1 %v231_v2, %s1200_s19  ;;  %432 = vrot.lane.b32.xlu0 %v913_v1, %s1200_s19 }
  0x3c   : > { %485 = vrot.lane.b32.xlu1 %v231_v2, %s1202_s23  ;;  %483 = vrot.lane.b32.xlu0 %v913_v1, %s1202_s23 }
  0x40   : > { %557 = vrot.lane.b32.xlu1 %v231_v2, %s1202_s23  ;;  %555 = vrot.lane.b32.xlu0 %v913_v1, %s1202_s23 }
  0x44   : > { %608 = vrot.lane.b32.xlu1 %v231_v2, %s1203_s26  ;;  %606 = vrot.lane.b32.xlu0 %v913_v1, %s1203_s26 }
  0x48   : > { %672 = vrot.lane.b32.xlu1 %v231_v2, %s1201_s21  ;;  %670 = vrot.lane.b32.xlu0 %v913_v1, %s1201_s21 }
  0x4c   : > { %736 = vrot.lane.b32.xlu1 %v231_v2, %s1200_s19  ;;  %734 = vrot.lane.b32.xlu0 %v913_v1, %s1200_s19  ;;  %s1205_s19 = smov [#allocation5]  }
  0x4d   : > { %s1117_s21 = sshll.u32 %s1205_s19, 4  ;;  %s1118_s21 = int_to_ptr.vmem [resolvable:$false] %s1117_s21 }
  0x4e   : > { %s1119_s23 = scalar_lea.vmem %s1118_s21, 512  ;;  %p1120_p0 = scmp.lt.s32.totalorder %s1383_s7, %s1118_s21 }
  0x4f   : > { %p1121_p1 = scmp.lt.s32.totalorder %s1119_s23, %s1113_s18 }
  0x50   : > { %220 = vperm.xlu0 %1085, %v213_v4   ;;  %289 = vperm.xlu1 %1086, %v910_v5  }
  0x51   : > { %p1122_p2 = por %p1121_p1, %p1120_p0 }
  0x53   : > { %p1123_p3 = pnand %p1122_p2, %p1116_p13 }
  0x9e   : > { %v310_v6 = vpop.permute.xlu1 %309  ;;  %v233_v7 = vpop.permute.xlu0 %232 }
  0xa2   : > { %v312_v8 = vpop.permute.xlu1 %311  ;;  %v235_v9 = vpop.permute.xlu0 %234 }
  0xa3   : > { %v237_v10 = vsel %vm236_vm1, %v233_v7, %v235_v9  ;;  %v313_v11 = vsel %vm236_vm1, %v310_v6, %v312_v8 }
  0xa4   : > { %v244_v12 = vsel %vm242_vm2, %v237_v10, 0  ;;  %v318_v13 = vsel %vm242_vm2, %v313_v11, 0 }
  0xa5   : > { %955 = vmatpush3.bf16.msra.mxu0 %v244_v12  ;;  %961 = vmatpush3.bf16.msra.mxu1 %v318_v13 }
  0xa6   : > { %v363_v16 = vpop.permute.xlu1 %362  ;;  %v361_v17 = vpop.permute.xlu0 %360  ;;  %966 = vmatprep.subr.bf16.mxu0 %v1198_v0  ;;  %972 = vmatprep.subr.bf16.mxu1 %v1198_v0 }
  0xa7   : > { %v365_v18 = vsel %vm364_vm3, %v361_v17, %v363_v16 }
  0xa8   : > { %v370_v19 = vsel %vm242_vm2, %v365_v18, 0  ;;  %957 = vmatmul.mubr.msk.bf16.vlgmr.msra.gmra.mxu0 %vm238_vm4, %v217_v14  ;;  %963 = vmatmul.mubr.msk.bf16.vlgmr.msra.gmra.mxu1 %vm238_vm4, %v299_v15 }
  0xa9   : > { %967 = vmatpush3.bf16.msra.mxu0 %v370_v19  ;;  %968 = vmatprep.mubr.msk.bf16.mxu0 %vm1199_vm0, %v1198_v0 }
  0xaa   : > { %v435_v20 = vpop.permute.xlu1 %434  ;;  %v433_v21 = vpop.permute.xlu0 %432  ;;  %974 = vmatprep.mubr.msk.bf16.mxu1 %vm1199_vm0, %v1198_v0  ;;  %978 = vmatprep.subr.bf16.mxu0 %v1198_v0 }
  0xab   : > { %v436_v22 = vsel %vm236_vm1, %v433_v21, %v435_v20 }
  0xac   : > { %v441_v23 = vsel %vm242_vm2, %v436_v22, 0 }
  0xad   : > { %973 = vmatpush3.bf16.msra.mxu1 %v441_v23 }
  0xae   : > { %v486_v26 = vpop.permute.xlu1 %485  ;;  %v484_v27 = vpop.permute.xlu0 %483  ;;  %984 = vmatprep.subr.bf16.mxu1 %v1198_v0 }
  0xaf   : > { %v488_v28 = vsel %vm487_vm5, %v484_v27, %v486_v26 }
  0xb0   : > { %v493_v29 = vsel %vm242_vm2, %v488_v28, 0  ;;  %969 = vmatmul.mubr.msk.bf16.vlgmr.msra.gmra.mxu0 %vm238_vm4, %v297_v24  ;;  %975 = vmatmul.mubr.msk.bf16.vlgmr.msra.gmra.mxu1 %vm238_vm4, %v422_v25 }
  0xb1   : > { %979 = vmatpush3.bf16.msra.mxu0 %v493_v29  ;;  %980 = vmatprep.mubr.msk.bf16.mxu0 %vm1199_vm0, %v1198_v0 }
  0xb2   : > { %v558_v30 = vpop.permute.xlu1 %557  ;;  %v556_v31 = vpop.permute.xlu0 %555  ;;  %986 = vmatprep.mubr.msk.bf16.mxu1 %vm1199_vm0, %v1198_v0  ;;  %990 = vmatprep.subr.bf16.mxu0 %v1198_v0 }
  0xb3   : > { %v559_v32 = vsel %vm487_vm5, %v556_v31, %v558_v30 }
  0xb4   : > { %v564_v33 = vsel %vm242_vm2, %v559_v32, 0 }
  0xb5   : > { %985 = vmatpush3.bf16.msra.mxu1 %v564_v33 }
  0xb6   : > { %v609_v36 = vpop.permute.xlu1 %608  ;;  %v607_v37 = vpop.permute.xlu0 %606  ;;  %996 = vmatprep.subr.bf16.mxu1 %v1198_v0 }
  0xb7   : > { %v611_v38 = vsel %vm610_vm6, %v607_v37, %v609_v36 }
  0xb8   : > { %v616_v39 = vsel %vm242_vm2, %v611_v38, 0  ;;  %981 = vmatmul.mubr.msk.bf16.vlgmr.msra.gmra.mxu0 %vm238_vm4, %v420_v34  ;;  %987 = vmatmul.mubr.msk.bf16.vlgmr.msra.gmra.mxu1 %vm238_vm4, %v545_v35 }
  0xb9   : > { %991 = vmatpush3.bf16.msra.mxu0 %v616_v39  ;;  %992 = vmatprep.mubr.msk.bf16.mxu0 %vm1199_vm0, %v1198_v0 }
  0xba   : > { %v673_v40 = vpop.permute.xlu1 %672  ;;  %v671_v41 = vpop.permute.xlu0 %670  ;;  %998 = vmatprep.mubr.msk.bf16.mxu1 %vm1199_vm0, %v1198_v0  ;;  %1002 = vmatprep.subr.bf16.mxu0 %v1198_v0 }
  0xbb   : > { %v674_v42 = vsel %vm364_vm3, %v671_v41, %v673_v40 }
  0xbc   : > { %v679_v43 = vsel %vm242_vm2, %v674_v42, 0 }
  0xbd   : > { %997 = vmatpush3.bf16.msra.mxu1 %v679_v43 }
  0xbe   : > { %v737_v46 = vpop.permute.xlu1 %736  ;;  %v735_v47 = vpop.permute.xlu0 %734 }
  0xbf   : > { %v738_v48 = vsel %vm236_vm1, %v735_v47, %v737_v46 }
  0xc0   : > { %v743_v49 = vsel %vm242_vm2, %v738_v48, 0  ;;  %993 = vmatmul.mubr.msk.bf16.vlgmr.msra.gmra.mxu0 %vm238_vm4, %v543_v44  ;;  %999 = vmatmul.mubr.msk.bf16.vlgmr.msra.gmra.mxu1 %vm238_vm4, %v660_v45 }
  0xc1   : > { %1003 = vmatpush3.bf16.msra.mxu0 %v743_v49  ;;  %1004 = vmatprep.mubr.msk.bf16.mxu0 %vm1199_vm0, %v1198_v0 }
  0xc8   : > { %1005 = vmatmul.mubr.msk.bf16.vlgmr.msra.gmra.mxu0 %vm238_vm4, %v724_v50 }
  0xcb   : > { %v221_v51 = vpop.permute.xlu0 %220  ;;  %v1369_v52 = vpop.permute.xlu1 %289 }
 0x168   : > { %v280_v53 = vpop.f32.mrf.mxu0  ;;  %v354_v54 = vpop.f32.mrf.mxu1 }
 0x169   : > { %v281_v55 = vadd.f32 %v280_v53, %v221_v51 }
 0x16a   : > { %v958_v56 = vpop.f32.mrf.mxu0  ;;  %v964_v57 = vpop.f32.mrf.mxu1 }
 0x16b   : > { %vm286_vm7 = vcmp.gt.f32.partialorder %v281_v55, 0.0  ;;  %v292_v58 = vmul.f32 %v1369_v52, %v281_v55 }
 0x16c   : > { %v283_v59 = vpop.f32.mrf.mxu0  ;;  %v357_v60 = vpop.f32.mrf.mxu1 }
 0x16d   : > { %v293_v61 = vsel %vm286_vm7, %v281_v55, %v292_v58 }
 0x16e   : > { %294 = vst [vmem:[%s1374_s6] sm:$0xf] %v293_v61  ;;  %v959_v62 = vpop.f32.mrf.mxu0  ;;  %v965_v63 = vpop.f32.mrf.mxu1 }
 0x170   : > { %v406_v0 = vpop.f32.mrf.mxu0  ;;  %v477_v1 = vpop.f32.mrf.mxu1 }
 0x171   : > { %v407_v2 = vadd.f32 %v406_v0, %v354_v54 }
 0x172   : > { %v970_v3 = vpop.f32.mrf.mxu0  ;;  %v976_v4 = vpop.f32.mrf.mxu1 }
 0x173   : > { %v412_v5 = vadd.f32 %v407_v2, %v221_v51 }
 0x174   : > { %v409_v6 = vpop.f32.mrf.mxu0  ;;  %v480_v7 = vpop.f32.mrf.mxu1 }
 0x175   : > { %vm413_vm8 = vcmp.gt.f32.partialorder %v412_v5, 0.0  ;;  %v414_v8 = vmul.f32 %v412_v5, %v1369_v52 }
 0x176   : > { %v971_v9 = vpop.f32.mrf.mxu0  ;;  %v977_v10 = vpop.f32.mrf.mxu1 }
 0x177   : > { %v415_v11 = vsel %vm413_vm8, %v412_v5, %v414_v8 }
 0x178   : > { %916 = vst [vmem:[%s1374_s6 + $0x4] sm:$0xf] %v415_v11  ;;  %v529_v12 = vpop.f32.mrf.mxu0  ;;  %v600_v13 = vpop.f32.mrf.mxu1 }
 0x179   : > { %v530_v14 = vadd.f32 %v529_v12, %v477_v1 }
 0x17a   : > { %v982_v15 = vpop.f32.mrf.mxu0  ;;  %v988_v16 = vpop.f32.mrf.mxu1 }
 0x17b   : > { %v535_v17 = vadd.f32 %v530_v14, %v221_v51 }
 0x17c   : > { %v532_v18 = vpop.f32.mrf.mxu0  ;;  %v603_v19 = vpop.f32.mrf.mxu1 }
 0x17d   : > { %vm536_vm9 = vcmp.gt.f32.partialorder %v535_v17, 0.0  ;;  %v537_v20 = vmul.f32 %v535_v17, %v1369_v52 }
 0x17e   : > { %v983_v21 = vpop.f32.mrf.mxu0  ;;  %v989_v22 = vpop.f32.mrf.mxu1 }
 0x17f   : > { %v538_v23 = vsel %vm536_vm9, %v535_v17, %v537_v20 }
 0x180   : > { %920 = vst [vmem:[%s1374_s6 + $0x8] sm:$0xf] %v538_v23  ;;  %v652_v24 = vpop.f32.mrf.mxu0  ;;  %v715_v25 = vpop.f32.mrf.mxu1 }
 0x181   : > { %v653_v28 = vadd.f32 %v652_v24, %v600_v13 }
 0x182   : > { %v994_v26 = vpop.f32.mrf.mxu0  ;;  %v1000_v27 = vpop.f32.mrf.mxu1 }
 0x183   : > { %v721_v33 = vadd.f32 %v715_v25, %v653_v28 }
 0x184   : > { %v655_v29 = vpop.f32.mrf.mxu0  ;;  %v718_v30 = vpop.f32.mrf.mxu1 }
 0x186   : > { %v995_v31 = vpop.f32.mrf.mxu0  ;;  %v1001_v32 = vpop.f32.mrf.mxu1 }
 0x188   : > { %v779_v34 = vpop.f32.mrf.mxu0 }
 0x189   : > { %v785_v35 = vadd.f32 %v779_v34, %v721_v33 }
 0x18a   : > { %v1006_v36 = vpop.f32.mrf.mxu0 }
 0x18b   : > { %v786_v37 = vadd.f32 %v785_v35, %v221_v51 }
 0x18c   : > { %v782_v38 = vpop.f32.mrf.mxu0 }
 0x18d   : > { %vm787_vm10 = vcmp.gt.f32.partialorder %v786_v37, 0.0  ;;  %v788_v39 = vmul.f32 %v786_v37, %v1369_v52 }
 0x18e   : > { %v1007_v40 = vpop.f32.mrf.mxu0 }
 0x18f   : > { %v789_v41 = vsel %vm787_vm10, %v786_v37, %v788_v39 }
 0x190   : > { %928 = vst [vmem:[%s1374_s6 + $0xc] sm:$0xf] %v789_v41 }
 0x191   : > { %1126 = shalt.err (!%p1123_p3)
}
 0x192   : > { %s1127_s26 = scalar_lea.hbm %s1389_s11, 256  ;;  %s1131_s29 = scalar_lea.hbm %s1442_s3, 512 }
 0x193   : > { %p1128_p5 = scmp.ne.s32.totalorder %s1389_s11, %s1127_s26  ;;  %p1132_p9 = scmp.lt.s32.totalorder %s1389_s11, %s1442_s3 }
 0x194   : > { %p1133_p12 = scmp.lt.s32.totalorder %s1131_s29, %s1127_s26 }
 0x195   : > { %p1129_p6 = pnand %p1128_p5, %p1268_p4 }
 0x196   : > { %p1134_p10 = por %p1133_p12, %p1132_p9 }
 0x197   : > { %p1130_p7 = pneg %p1129_p6 }
 0x199   : > { %p1135_p11 = pnand %p1134_p10, %p1130_p7 }
 0x19b   : > { %1138 = shalt.err (!%p1135_p11)
}
 0x19c   : > { %s1206_s5 = smov 64   ;;  %s1207_s6 = smov 4  }
 0x19d   : > { %1012 = dma.vmem_to_hbm [thread:$0]  (%p1268_p4), %s1383_s7, 256, %s1389_s11, %s1394_s15, %s1206_s5, %s1206_s5, %s1207_s6  }
 0x19e PF: > { %p1024_p13 = scmp.ge.s32.totalorder %s1193_s17, 2  ;;  %s822_s8 = sand.u32 1, %s1173_s12  }
 0x19f   : > { %s823_s9 = scalar_lea.sflag [#allocation4], %s822_s8 }
 0x1a0   : > { %p1019_p0 = pnand %p1024_p13, %p1275_p8 }
 0x1a2   : > { %p1020_p1 = pneg %p1019_p0 }
 0x1a4   : > { %1168 = dma.done.wait (%p1020_p1), %s823_s9, 256  }
 0x1a5   : > { %1170 = vsyncadd (%p1020_p1), %s823_s9, 4294967040  ;;  %s17_s17 = sadd.s32 1, %s1193_s17   ;;  %s1447_s12 = smov %s1177_s13 }
 0x1a6   : > { %p14_p2 = scmp.ge.s32.totalorder %s17_s17, 4   ;;  %s1448_s13 = smov %s1181_s14 }
 0x1a7   : > { %s1449_s14 = smov %s1281_s25  ;;  %s1450_s15 = smov %s1189_s16 }
 0x1a8   : > { %s1451_s16 = smov %s1453_s20  ;;  %16 = sbr.rel (!%p14_p2) target bundleno = 5 (0x5), region = 84 }
 0x1ad   :  { %828 = vsyncpa [#allocation3], 1 }
 0x1ae   :  { %830 = vsyncpa [#allocation3 + $0x1], 1 }
 0x1af   :  { %831 = vsyncpa [#allocation4], 1 }
 0x1b0   :  { %833 = vsyncpa [#allocation4 + $0x1], 1 }

</bundles_post_ra>
